<compile_context>
chip_gen: v6e
topology: v6e:2x2x1
jax: 0.10.0
libtpu: 0.0.40
codegen_flags: <defaults>
</compile_context>

<pallas_src>
import functools

import jax
import jax.numpy as jnp
from jax.experimental import pallas as pl
from jax.experimental.pallas import tpu as pltpu


# ----------------------------------------------------------------------------
# Pallas kernel: LayerNorm + Linear(E,H)+tanh + fused [Linear(H,D); GLU] matmul.
# Transposed domain: features along sublanes, frames along lanes.
# ----------------------------------------------------------------------------
def _band_merge_kernel(x_ref, w1_ref, b1_ref, wglu_ref, bglu_ref, o_ref):
    x = x_ref[0].astype(jnp.float32)                       # (E, TT)
    inv_e = 1.0 / x.shape[0]

    # One-pass LayerNorm moments over the feature (sublane) axis
    # (biased variance, eps=1e-5; gamma/beta are folded into W1/b1 on the host).
    mean = jnp.sum(x, axis=0, keepdims=True) * inv_e       # (1, TT)
    ex2 = jnp.sum(x * x, axis=0, keepdims=True) * inv_e
    var = jnp.maximum(ex2 - mean * mean, 0.0)
    xn = (x - mean) * jax.lax.rsqrt(var + 1e-5)            # (E, TT)

    if w1_ref.dtype != jnp.float32:
        xn = xn.astype(w1_ref.dtype)

    # Linear(E,H) (+ folded LN affine) + tanh: (H,E) @ (E,TT) -> (H,TT)
    h = jnp.tanh(jnp.dot(w1_ref[...], xn,
                         preferred_element_type=jnp.float32) + b1_ref[...])

    if wglu_ref.dtype != jnp.float32:
        h = h.astype(wglu_ref.dtype)

    # Linear(H,D) folded into the GLU's two Linears -> one (2D,H) @ (H,TT) pass.
    lg = jnp.dot(wglu_ref[...], h,
                 preferred_element_type=jnp.float32) + bglu_ref[...]   # (2D, TT)
    D = o_ref.shape[1]
    lin = lg[:D]
    gate = lg[D:]
    o_ref[0] = (lin * jax.nn.sigmoid(gate)).astype(o_ref.dtype)


# ----------------------------------------------------------------------------
# Host-side parameter preparation (one-time folds / reorders / fusion)
# ----------------------------------------------------------------------------
def _prepare_params(params, n_bins, weight_dtype):
    gamma, beta, w1, b1, w2, b2, wa, ba, wg, bg = params
    D = 2 * n_bins
    # Real parts first, imag parts second (contiguous complex split in the wrapper).
    perm = jnp.concatenate([jnp.arange(0, D, 2), jnp.arange(1, D, 2)])

    # Fold LayerNorm affine into the first Linear.
    w1f = (w1 * gamma[None, :]).astype(weight_dtype)            # (H, E)
    b1f = (b1 + w1 @ beta).reshape(-1, 1).astype(jnp.float32)   # (H, 1)

    # Fuse GLU's two Linears (rows permuted real|imag) AND fold Linear(H,D) into
    # them — exact algebra, no nonlinearity between them:
    #   GLU(W2 h + b2) = (Wa(W2 h + b2) + ba) * sigmoid(Wg(W2 h + b2) + bg)
    wag = jnp.concatenate([wa[perm], wg[perm]], axis=0)         # (2D, D)
    bag = jnp.concatenate([ba[perm], bg[perm]])                 # (2D,)
    wgluf = (wag @ w2).astype(weight_dtype)                     # (2D, H)
    bgluf = (wag @ b2 + bag).reshape(-1, 1).astype(jnp.float32)  # (2D, 1)
    return w1f, b1f, wgluf, bgluf


# ----------------------------------------------------------------------------
# Generation-aware budget: (vmem cap, default frame tile, TC-per-chip guess)
# ----------------------------------------------------------------------------
def _tpu_budget():
    try:
        phys = int(pltpu.get_tpu_info().vmem_capacity_bytes)
    except Exception:
        phys = 128 * 1024 * 1024
    if phys <= 64 * 1024 * 1024:
        # v7x-class: 64 MiB per TC, 2 TCs per chip -> leave headroom, smaller tiles.
        return 48 * 1024 * 1024, 1024, 2
    # v5e / v6e: 128 MiB physical, 1 TC -> allow >64 MiB, bigger tiles.
    return 100 * 1024 * 1024, 2048, 1


def _frame_tiling(T, tile_t, min_tiles=1):
    """Pick a frame tile: full T if small, else a multiple of 128 lanes."""
    tile_t = max(8, int(tile_t))
    if min_tiles > 1 and T >= 2 * 128:
        # Make sure the grid has at least `min_tiles` frame tiles (both TCs busy).
        tile_t = min(tile_t, max(128, ((T // min_tiles) // 128) * 128))
    if T <= tile_t:
        return T                 # single full-extent block (alignment not required)
    return max(128, (tile_t // 128) * 128)


def _padded_bytes(a):
    """VMEM footprint estimate of a 2-D array incl. (sublane, lane) tile padding."""
    sub = max(8, 32 // a.dtype.itemsize)
    r = pl.cdiv(a.shape[0], sub) * sub
    c = pl.cdiv(a.shape[1], 128) * 128
    return r * c * a.dtype.itemsize


# ----------------------------------------------------------------------------
# Module wrapper
# ----------------------------------------------------------------------------
def band_merge_block(x, params, *, n_bins, tile_t=None, weight_dtype=jnp.float32):
    """x: (*batch, embed_dim, n_frames) -> (*batch, n_bins, n_frames) complex64."""
    *batch_shape, E, T = x.shape
    xf = x.reshape(-1, E, T)                    # (B, E, T) -- native layout, no transpose
    B = xf.shape[0]
    D = 2 * n_bins

    w1f, b1f, wgluf, bgluf = _prepare_params(params, n_bins, weight_dtype)
    H = w1f.shape[0]

    vmem_cap, default_tt, n_cores = _tpu_budget()
    if tile_t is None:
        tile_t = default_tt

    # Small-T: pack the batch into the lane/frame axis for lane-dense stores
    # (exact: every kernel op is independent per frame column).
    packed = (T < 128 and B > 1)
    if packed:
        xk = jnp.transpose(xf, (1, 0, 2)).reshape(1, E, B * T)
        Bk, Tk = 1, B * T
    else:
        xk, Bk, Tk = xf, B, T

    min_tiles = n_cores if Bk < n_cores else 1
    tt = _frame_tiling(Tk, tile_t, min_tiles)

    weight_bytes = sum(_padded_bytes(a) for a in (w1f, b1f, wgluf, bgluf))

    def vmem_need(t):
        blocks = 2 * (E * t * xk.dtype.itemsize + D * t * 4)   # double-buffered in/out
        acts = (2 * E + H + 4 * D) * t * 4                     # in-kernel f32 temps
        return 2 * weight_bytes + blocks + acts                # weights double-buffered

    # Shrink the (128-aligned) frame tile until it fits the generation's VMEM cap.
    while tt % 128 == 0 and tt > 256 and vmem_need(tt) > vmem_cap:
        tt = max(256, ((tt // 2 + 127) // 128) * 128)

    n_t = pl.cdiv(Tk, tt)
    vmem_limit = int(min(vmem_cap, max(32 * 1024 * 1024, int(1.5 * vmem_need(tt)))))

    # Advisory cost estimate so XLA can schedule around the call.
    n_tok = Bk * Tk
    flops = 2 * n_tok * (E * H + H * 2 * D)
    transcendentals = n_tok * (H + D)
    bytes_accessed = (int(xk.size) * xk.dtype.itemsize
                      + Bk * D * Tk * 4
                      + weight_bytes)
    cost = pl.CostEstimate(flops=int(flops), transcendentals=int(transcendentals),
                           bytes_accessed=int(bytes_accessed))

    const2d = lambda shp: pl.BlockSpec(shp, lambda b, t: (0, 0))

    out = pl.pallas_call(
        _band_merge_kernel,
        out_shape=jax.ShapeDtypeStruct((Bk, D, Tk), jnp.float32),
        grid_spec=pltpu.PrefetchScalarGridSpec(
            num_scalar_prefetch=0,
            grid=(Bk, n_t),
            in_specs=[
                pl.BlockSpec((1, E, tt), lambda b, t: (b, 0, t)),   # x slab
                const2d((H, E)),        # W1 (gamma folded)
                const2d((H, 1)),        # b1 (beta folded)
                const2d((2 * D, H)),    # fused [W2 -> GLU] weight  [Wa_r;Wg_r] @ W2
                const2d((2 * D, 1)),    # fused GLU bias
            ],
            out_specs=pl.BlockSpec((1, D, tt), lambda b, t: (b, 0, t)),
        ),
        compiler_params=pltpu.CompilerParams(
            dimension_semantics=("parallel", "parallel"),
            vmem_limit_bytes=vmem_limit),
        cost_estimate=cost,
    )(xk, w1f, b1f, wgluf, bgluf)

    if packed:
        out = out.reshape(D, B, T).transpose(1, 0, 2)    # back to (B, D, T)

    real = out[:, :n_bins, :]                            # contiguous halves
    imag = out[:, n_bins:, :]
    cplx = jax.lax.complex(real, imag)                   # (B, n_bins, T) complex64
    return cplx.reshape(*batch_shape, n_bins, T)


# ----------------------------------------------------------------------------
# Deterministic parameter init (PyTorch Linear convention: weight (out, in))
# ----------------------------------------------------------------------------
def init_params(key, embed_dim, hidden_channels, n_bins):
    D = 2 * n_bins
    ks = jax.random.split(key, 10)
    s = 0.05
    gamma = 1.0 + 0.1 * jax.random.normal(ks[0], (embed_dim,), jnp.float32)
    beta = 0.1 * jax.random.normal(ks[1], (embed_dim,), jnp.float32)
    w1 = s * jax.random.normal(ks[2], (hidden_channels, embed_dim), jnp.float32)
    b1 = s * jax.random.normal(ks[3], (hidden_channels,), jnp.float32)
    w2 = s * jax.random.normal(ks[4], (D, hidden_channels), jnp.float32)
    b2 = s * jax.random.normal(ks[5], (D,), jnp.float32)
    wa = s * jax.random.normal(ks[6], (D, D), jnp.float32)
    ba = s * jax.random.normal(ks[7], (D,), jnp.float32)
    wg = s * jax.random.normal(ks[8], (D, D), jnp.float32)
    bg = s * jax.random.normal(ks[9], (D,), jnp.float32)
    return gamma, beta, w1, b1, w2, b2, wa, ba, wg, bg


# Pure-JAX reference (mirrors the PyTorch forward exactly)
def reference(x, params, *, n_bins):
    gamma, beta, w1, b1, w2, b2, wa, ba, wg, bg = params
    *batch_shape, E, T = x.shape
    xf = x.reshape(-1, E, T)
    tok = jnp.transpose(xf, (0, 2, 1)).astype(jnp.float32)      # (B, T, E)
    mean = jnp.mean(tok, axis=-1, keepdims=True)
    var = jnp.mean((tok - mean) ** 2, axis=-1, keepdims=True)
    xn = (tok - mean) / jnp.sqrt(var + 1e-5) * gamma + beta
    h = jnp.tanh(xn @ w1.T + b1)
    z = h @ w2.T + b2
    y = (z @ wa.T + ba) * jax.nn.sigmoid(z @ wg.T + bg)         # (B, T, 2*n_bins)
    Bb = y.shape[0]
    y = y.reshape(Bb, T, n_bins, 2)
    c = jax.lax.complex(y[..., 0], y[..., 1])                   # (B, T, n_bins)
    c = jnp.transpose(c, (0, 2, 1))                             # (B, n_bins, T)
    return c.reshape(*batch_shape, n_bins, T)


if __name__ == "__main__":
    # Small, module-consistent shapes
    n_bins = 16
    embed_dim = 32
    hidden_channels = 64   # small stand-in for the default 512
    n_frames = 8
    batch = 2              # input: (batch, embed_dim, n_frames)

    key = jax.random.PRNGKey(0)
    k_x, k_p, k_x2 = jax.random.split(key, 3)
    x = jax.random.normal(k_x, (batch, embed_dim, n_frames), jnp.float32)
    params = init_params(k_p, embed_dim, hidden_channels, n_bins)

    fn = functools.partial(band_merge_block, n_bins=n_bins)
    out = jax.block_until_ready(fn(x, params))

    ref = reference(x, params, n_bins=n_bins)
    assert out.shape == (batch, n_bins, n_frames)
    assert out.dtype == jnp.complex64
    # W2 is folded into the GLU weight, so f32 rounding differs slightly vs reference.
    assert jnp.allclose(out, ref, atol=1e-4, rtol=1e-4)

    # Multi-tile path: non-multiple-of-128 T, partial last block (no pad / no slice).
    x2 = jax.random.normal(k_x2, (1, embed_dim, 300), jnp.float32)
    out2 = jax.block_until_ready(
        band_merge_block(x2, params, n_bins=n_bins, tile_t=128))
    ref2 = reference(x2, params, n_bins=n_bins)
    assert out2.shape == (1, n_bins, 300)
    assert jnp.allclose(out2, ref2, atol=1e-4, rtol=1e-4)

    # bf16 weight fast path (halves weight DMA / VMEM, bf16 MXU); looser tolerance.
    out_bf16 = jax.block_until_ready(
        band_merge_block(x, params, n_bins=n_bins, weight_dtype=jnp.bfloat16))
    assert out_bf16.shape == (batch, n_bins, n_frames)
    assert jnp.allclose(out_bf16, ref, atol=5e-2, rtol=5e-2)

    print("KERNEL_OK")
</pallas_src>

<mosaic_0001>
module attributes {stable_mosaic.version = 11 : i64} {
  func.func @_band_merge_kernel(%arg0: i32, %arg1: i32, %arg2: memref<1x32x16xf32, #tpu.memory_space<vmem>>, %arg3: memref<64x32xf32, #tpu.memory_space<vmem>>, %arg4: memref<64x1xf32, #tpu.memory_space<vmem>>, %arg5: memref<64x64xf32, #tpu.memory_space<vmem>>, %arg6: memref<64x1xf32, #tpu.memory_space<vmem>>, %arg7: memref<1x32x16xf32, #tpu.memory_space<vmem>>) attributes {dimension_semantics = [#tpu.dimension_semantics<parallel>, #tpu.dimension_semantics<parallel>], iteration_bounds = array<i64: 1, 1>, scalar_prefetch = 0 : i64, scratch_operands = 0 : i64, tpu.core_type = #tpu.core_type<tc>, window_params = [{transform_indices = @transform_0, window_bounds = array<i64: 1, 32, 16>}, {pipeline_mode = #tpu.pipeline_mode<synchronous>, transform_indices = @transform_1, window_bounds = array<i64: 64, 32>}, {pipeline_mode = #tpu.pipeline_mode<synchronous>, transform_indices = @transform_2, window_bounds = array<i64: 64, 1>}, {pipeline_mode = #tpu.pipeline_mode<synchronous>, transform_indices = @transform_3, window_bounds = array<i64: 64, 64>}, {pipeline_mode = #tpu.pipeline_mode<synchronous>, transform_indices = @transform_4, window_bounds = array<i64: 64, 1>}, {transform_indices = @transform_5, window_bounds = array<i64: 1, 32, 16>}]} {
    %c0 = arith.constant 0 : index
    %c0_0 = arith.constant 0 : index
    %c0_1 = arith.constant 0 : index
    %0 = vector.load %arg2[%c0, %c0_0, %c0_1] : memref<1x32x16xf32, #tpu.memory_space<vmem>>, vector<1x32x16xf32>
    %1 = vector.shape_cast %0 : vector<1x32x16xf32> to vector<32x16xf32>
    %cst = arith.constant dense<0.000000e+00> : vector<16xf32>
    %2 = vector.multi_reduction <add>, %1, %cst [0] : vector<32x16xf32> to vector<16xf32>
    %3 = vector.shape_cast %2 : vector<16xf32> to vector<1x16xf32>
    %cst_2 = arith.constant 3.125000e-02 : f32
    %4 = vector.broadcast %cst_2 : f32 to vector<1x16xf32>
    %5 = arith.mulf %3, %4 : vector<1x16xf32>
    %6 = arith.mulf %1, %1 : vector<32x16xf32>
    %cst_3 = arith.constant dense<0.000000e+00> : vector<16xf32>
    %7 = vector.multi_reduction <add>, %6, %cst_3 [0] : vector<32x16xf32> to vector<16xf32>
    %8 = vector.shape_cast %7 : vector<16xf32> to vector<1x16xf32>
    %cst_4 = arith.constant 3.125000e-02 : f32
    %9 = vector.broadcast %cst_4 : f32 to vector<1x16xf32>
    %10 = arith.mulf %8, %9 : vector<1x16xf32>
    %11 = arith.mulf %5, %5 : vector<1x16xf32>
    %12 = arith.subf %10, %11 : vector<1x16xf32>
    %cst_5 = arith.constant 0.000000e+00 : f32
    %13 = vector.broadcast %cst_5 : f32 to vector<1x16xf32>
    %14 = arith.maximumf %12, %13 : vector<1x16xf32>
    %15 = vector.broadcast %5 : vector<1x16xf32> to vector<32x16xf32>
    %16 = arith.subf %1, %15 : vector<32x16xf32>
    %cst_6 = arith.constant 9.99999974E-6 : f32
    %17 = vector.broadcast %cst_6 : f32 to vector<1x16xf32>
    %18 = arith.addf %14, %17 : vector<1x16xf32>
    %19 = math.rsqrt %18 : vector<1x16xf32>
    %20 = vector.broadcast %19 : vector<1x16xf32> to vector<32x16xf32>
    %21 = arith.mulf %16, %20 : vector<32x16xf32>
    %c0_7 = arith.constant 0 : index
    %c0_8 = arith.constant 0 : index
    %22 = vector.load %arg3[%c0_7, %c0_8] : memref<64x32xf32, #tpu.memory_space<vmem>>, vector<64x32xf32>
    %cst_9 = arith.constant dense<0.000000e+00> : vector<64x16xf32>
    %23 = tpu.matmul %22, %21, %cst_9 {dimension_numbers = #tpu.dot_dimension_numbers<[1], [0], [0], [1], [0, 0, 1, 1], [], []>} : vector<64x32xf32>, vector<32x16xf32>, vector<64x16xf32> -> vector<64x16xf32>
    %c0_10 = arith.constant 0 : index
    %c0_11 = arith.constant 0 : index
    %24 = vector.load %arg4[%c0_10, %c0_11] : memref<64x1xf32, #tpu.memory_space<vmem>>, vector<64x1xf32>
    %25 = vector.broadcast %24 : vector<64x1xf32> to vector<64x16xf32>
    %26 = arith.addf %23, %25 : vector<64x16xf32>
    %27 = math.tanh %26 : vector<64x16xf32>
    %c0_12 = arith.constant 0 : index
    %c0_13 = arith.constant 0 : index
    %28 = vector.load %arg5[%c0_12, %c0_13] : memref<64x64xf32, #tpu.memory_space<vmem>>, vector<64x64xf32>
    %cst_14 = arith.constant dense<0.000000e+00> : vector<64x16xf32>
    %29 = tpu.matmul %28, %27, %cst_14 {dimension_numbers = #tpu.dot_dimension_numbers<[1], [0], [0], [1], [0, 0, 1, 1], [], []>} : vector<64x64xf32>, vector<64x16xf32>, vector<64x16xf32> -> vector<64x16xf32>
    %c0_15 = arith.constant 0 : index
    %c0_16 = arith.constant 0 : index
    %30 = vector.load %arg6[%c0_15, %c0_16] : memref<64x1xf32, #tpu.memory_space<vmem>>, vector<64x1xf32>
    %31 = vector.broadcast %30 : vector<64x1xf32> to vector<64x16xf32>
    %32 = arith.addf %29, %31 : vector<64x16xf32>
    %33 = vector.extract_strided_slice %32 {offsets = [0, 0], sizes = [32, 16], strides = [1, 1]} : vector<64x16xf32> to vector<32x16xf32>
    %34 = vector.extract_strided_slice %32 {offsets = [32, 0], sizes = [32, 16], strides = [1, 1]} : vector<64x16xf32> to vector<32x16xf32>
    %35 = arith.negf %34 : vector<32x16xf32>
    %36 = math.exp %35 : vector<32x16xf32>
    %cst_17 = arith.constant 1.000000e+00 : f32
    %37 = vector.broadcast %cst_17 : f32 to vector<32x16xf32>
    %38 = arith.addf %37, %36 : vector<32x16xf32>
    %39 = arith.divf %37, %38 : vector<32x16xf32>
    %40 = arith.mulf %33, %39 : vector<32x16xf32>
    %c0_18 = arith.constant 0 : index
    %c0_19 = arith.constant 0 : index
    %c0_20 = arith.constant 0 : index
    %41 = vector.load %arg7[%c0_18, %c0_19, %c0_20] : memref<1x32x16xf32, #tpu.memory_space<vmem>>, vector<1x32x16xf32>
    %42 = vector.shape_cast %41 : vector<1x32x16xf32> to vector<32x16xf32>
    %43 = vector.shape_cast %40 : vector<32x16xf32> to vector<1x32x16xf32>
    tpu.vector_store %arg7[%c0_18, %c0_19, %c0_20], %43 {strides = array<i32>} : memref<1x32x16xf32, #tpu.memory_space<vmem>>, vector<1x32x16xf32>,
    return
  }
  func.func @transform_0(%arg0: i32, %arg1: i32) -> (i32, i32, i32) {
    %c0_i32 = arith.constant 0 : i32
    %c0_i32_0 = arith.constant 0 : i32
    return %arg0, %c0_i32, %arg1 : i32, i32, i32
  }
  func.func @transform_1(%arg0: i32, %arg1: i32) -> (i32, i32) {
    %c0_i32 = arith.constant 0 : i32
    %c0_i32_0 = arith.constant 0 : i32
    %c0_i32_1 = arith.constant 0 : i32
    return %c0_i32, %c0_i32_0 : i32, i32
  }
  func.func @transform_2(%arg0: i32, %arg1: i32) -> (i32, i32) {
    %c0_i32 = arith.constant 0 : i32
    %c0_i32_0 = arith.constant 0 : i32
    %c0_i32_1 = arith.constant 0 : i32
    return %c0_i32, %c0_i32_0 : i32, i32
  }
  func.func @transform_3(%arg0: i32, %arg1: i32) -> (i32, i32) {
    %c0_i32 = arith.constant 0 : i32
    %c0_i32_0 = arith.constant 0 : i32
    %c0_i32_1 = arith.constant 0 : i32
    return %c0_i32, %c0_i32_0 : i32, i32
  }
  func.func @transform_4(%arg0: i32, %arg1: i32) -> (i32, i32) {
    %c0_i32 = arith.constant 0 : i32
    %c0_i32_0 = arith.constant 0 : i32
    %c0_i32_1 = arith.constant 0 : i32
    return %c0_i32, %c0_i32_0 : i32, i32
  }
  func.func @transform_5(%arg0: i32, %arg1: i32) -> (i32, i32, i32) {
    %c0_i32 = arith.constant 0 : i32
    %c0_i32_0 = arith.constant 0 : i32
    return %arg0, %c0_i32, %arg1 : i32, i32, i32
  }
}

</mosaic_0001>

<bundles_post_ra>
// kernel: tpu_custom_call.1
= control target key start
LH: loop header
LB: loop body
LE: loop exit
PB: predicated region body
PF: predicated region fallthrough
CT: control target
= control target key end

     0   :  { %vm24_vm0 = vcmask 130048   ;;  %vm126_vm1 = vcmask 261120   ;;  %v635_v3 = vmov 0   ;;  %vm320_vm2 = vcmask 523264   ;;  %s838_s0 = inlined_call_operand.vmem [shape: f32[1,32,16], index: 0, kind: input, shape index: {}]   ;;  %s839_s1 = inlined_call_operand.vmem [shape: f32[64,32], index: 1, kind: input, shape index: {}]   ;;  %s840_s2 = inlined_call_operand.vmem [shape: f32[64,1], index: 2, kind: input, shape index: {}]   ;;  %s841_s4 = inlined_call_operand.vmem [shape: f32[64,1], index: 4, kind: input, shape index: {}]   ;;  %s842_s3 = inlined_call_operand.vmem [shape: f32[64,64], index: 3, kind: input, shape index: {}]   ;;  %s843_s5 = inlined_call_operand.vmem [shape: f32[1,32,16], index: 5, kind: output, shape index: {}]  }
   0x1   :  { %v669_v0 = vld [vmem:[%s838_s0] sm:$0xff]  ;;  %v674_v1 = vld [vmem:[%s838_s0 + $0x8] sm:$0xff]  ;;  %v679_v2 = vld [vmem:[%s838_s0 + $0x10] sm:$0xff]  ;;  %599 = vset.pattern.permute.xlu0 %v635_v3  ;;  %600 = vset.pattern.permute.xlu1 %v635_v3 }
   0x2   :  { %v684_v4 = vld [vmem:[%s838_s0 + $0x18] sm:$0xff]  ;;  %v25_v5 = vsel %vm24_vm0, %v669_v0, 0.0  ;;  %v26_v6 = vsel %vm24_vm0, %v674_v1, 0.0  ;;  %v28_v7 = vsel %vm24_vm0, %v679_v2, 0.0  ;;  %v39_v8 = vmul.f32 %v669_v0, %v669_v0  ;;  %v70_v9 = vld [vmem:[%s839_s1] sm:$0xff]  ;;  %v83_v20 = vld [vmem:[%s840_s2 + $0x28] sm:$0xff] }
   0x3   :  { %v27_v10 = vadd.f32 %v26_v6, %v25_v5  ;;  %v40_v11 = vmul.f32 %v674_v1, %v674_v1  ;;  %v41_v12 = vmul.f32 %v679_v2, %v679_v2  ;;  %542 = vmatprep.mubr.msk.f32.mxu0 %vm126_vm1, %v70_v9  ;;  %v30_v13 = vsel %vm24_vm0, %v684_v4, 0.0  ;;  %v85_v19 = vld [vmem:[%s840_s2 + $0x38] sm:$0xff]  ;;  %113 = vperm.xlu1 %600, %v83_v20   ;;  %v84_v24 = vld [vmem:[%s840_s2 + $0x30] sm:$0xff]  ;;  %v82_v25 = vld [vmem:[%s840_s2 + $0x20] sm:$0xff] }
   0x4   :  { %v42_v14 = vmul.f32 %v684_v4, %v684_v4  ;;  %v43_v15 = vsel %vm24_vm0, %v39_v8, 0.0  ;;  %123 = vperm.xlu0 %599, %v85_v19   ;;  %v81_v30 = vld [vmem:[%s840_s2 + $0x18] sm:$0xff]  ;;  %v80_v31 = vld [vmem:[%s840_s2 + $0x10] sm:$0xff]  ;;  %v79_v36 = vld [vmem:[%s840_s2 + $0x8] sm:$0xff] }
   0x5   :  { %v29_v16 = vadd.f32 %v28_v7, %v27_v10  ;;  %v44_v17 = vsel %vm24_vm0, %v40_v11, 0.0  ;;  %v46_v18 = vsel %vm24_vm0, %v41_v12, 0.0  ;;  %v78_v37 = vld [vmem:[%s840_s2] sm:$0xff]  ;;  %v277_v43 = vld [vmem:[%s841_s4 + $0x28] sm:$0xff]  ;;  %v278_v48 = vld [vmem:[%s841_s4 + $0x30] sm:$0xff] }
   0x6   :  { %v45_v21 = vadd.f32 %v44_v17, %v43_v15  ;;  %v48_v23 = vsel %vm24_vm0, %v42_v14, 0.0  ;;  %v276_v42 = vld [vmem:[%s841_s4 + $0x20] sm:$0xff]  ;;  %v279_v49 = vld [vmem:[%s841_s4 + $0x38] sm:$0xff]  ;;  %v273_v53 = vld [vmem:[%s841_s4 + $0x8] sm:$0xff] }
   0x7   :  { %v31_v22 = vadd.f32 %v30_v13, %v29_v16  ;;  %108 = vperm.xlu1 %600, %v82_v25   ;;  %v272_v52 = vld [vmem:[%s841_s4] sm:$0xff]  ;;  %v274_v56 = vld [vmem:[%s841_s4 + $0x10] sm:$0xff]  ;;  %v275_v57 = vld [vmem:[%s841_s4 + $0x18] sm:$0xff] }
   0x8   :  { %v47_v26 = vadd.f32 %v46_v18, %v45_v21  ;;  %118 = vperm.xlu0 %599, %v84_v24   ;;  %v75_v7 = vld [vmem:[%s839_s1 + $0x28] sm:$0xff]  ;;  %v76_v8 = vld [vmem:[%s839_s1 + $0x30] sm:$0xff]  ;;  %v77_v9 = vld [vmem:[%s839_s1 + $0x38] sm:$0xff] }
   0x9   :  { %v32_v27 = vrot.slane %v31_v22, 4  ;;  %v264_v10 = vld [vmem:[%s842_s3] sm:$0xff]  ;;  %v266_v11 = vld [vmem:[%s842_s3 + $0x10] sm:$0xff] }
   0xa   :  { %v49_v28 = vadd.f32 %v48_v23, %v47_v26  ;;  %573 = vmatprep.mubr.msk.f32.mxu1 %vm320_vm2, %v266_v11 }
   0xb   :  { %v33_v29 = vadd.f32 %v32_v27, %v31_v22  ;;  %98 = vperm.xlu1 %600, %v80_v31  }
   0xc   :  { %v50_v32 = vrot.slane %v49_v28, 4  ;;  %103 = vperm.xlu0 %599, %v81_v30  }
   0xd   :  { %v34_v33 = vrot.slane %v33_v29, 2 }
   0xe   :  { %v51_v34 = vadd.f32 %v50_v32, %v49_v28 }
   0xf   :  { %v35_v35 = vadd.f32 %v34_v33, %v33_v29  ;;  %88 = vperm.xlu1 %600, %v78_v37  }
  0x10   :  { %v52_v38 = vrot.slane %v51_v34, 2  ;;  %93 = vperm.xlu0 %599, %v79_v36  }
  0x11   :  { %v36_v39 = vrot.slane %v35_v35, 1 }
  0x12   :  { %v53_v40 = vadd.f32 %v52_v38, %v51_v34 }
  0x13   :  { %v37_v41 = vadd.f32 %v36_v39, %v35_v35  ;;  %307 = vperm.xlu1 %600, %v277_v43  }
  0x14   :  { %v54_v44 = vrot.slane %v53_v40, 1  ;;  %302 = vperm.xlu0 %599, %v276_v42  }
  0x15   :  { %v38_v45 = vmul.f32 0.03125, %v37_v41 }
  0x16   :  { %v55_v46 = vadd.f32 %v54_v44, %v53_v40  ;;  %v265_v44 = vld [vmem:[%s842_s3 + $0x8] sm:$0xff] }
  0x17   :  { %v57_v47 = vmul.f32 %v38_v45, %v38_v45  ;;  %317 = vperm.xlu1 %600, %v279_v49   ;;  %v63_v58 = vsub.f32 %v684_v4, %v38_v45  ;;  %v62_v59 = vsub.f32 %v679_v2, %v38_v45  ;;  %v61_v60 = vsub.f32 %v674_v1, %v38_v45  ;;  %v71_v4 = vld [vmem:[%s839_s1 + $0x8] sm:$0xff]  ;;  %v72_v1 = vld [vmem:[%s839_s1 + $0x10] sm:$0xff]  ;;  %v74_v2 = vld [vmem:[%s839_s1 + $0x20] sm:$0xff] }
  0x18   :  { %v56_v50 = vmul.f32 0.03125, %v55_v46  ;;  %312 = vperm.xlu0 %599, %v278_v48   ;;  %v60_v3 = vsub.f32 %v669_v0, %v38_v45  ;;  %v73_v0 = vld [vmem:[%s839_s1 + $0x18] sm:$0xff]  ;;  %v268_v46 = vld [vmem:[%s842_s3 + $0x20] sm:$0xff]  ;;  %v270_v48 = vld [vmem:[%s842_s3 + $0x30] sm:$0xff] }
  0x19   :  { %v267_v45 = vld [vmem:[%s842_s3 + $0x18] sm:$0xff] }
  0x1a   :  { %v58_v51 = vsub.f32 %v56_v50, %v57_v47  ;;  %v269_v47 = vld [vmem:[%s842_s3 + $0x28] sm:$0xff]  ;;  %v271_v49 = vld [vmem:[%s842_s3 + $0x38] sm:$0xff] }
  0x1b   :  { %287 = vperm.xlu1 %600, %v273_v53  }
  0x1c   :  { %v59_v54 = vmax.f32 %v58_v51, 0.0  ;;  %282 = vperm.xlu0 %599, %v272_v52  }
  0x1e   :  { %v64_v55 = vadd.f32 1e-05, %v59_v54 }
  0x1f   :  { %297 = vperm.xlu1 %600, %v275_v57  }
  0x20   :  { %601 = vrsqrt.f32 %v64_v55  ;;  %292 = vperm.xlu0 %599, %v274_v56  }
  0x2d   :  { %v602_v61 = vpop.eup %601 }
  0x2e   :  { %v69_v62 = vmul.f32 %v602_v61, %v63_v58  ;;  %v68_v63 = vmul.f32 %v602_v61, %v62_v59  ;;  %v67_v5 = vmul.f32 %v602_v61, %v61_v60  ;;  %v66_v6 = vmul.f32 %v602_v61, %v60_v3 }
  0x30   :  { %534 = vmatprep.subr.mxu0 %v69_v62 }
  0x31   :  { %535 = vmatpush3.msra.mxu0 %v69_v62 }
  0x32   :  { %536 = vmatprep.subr.mxu0 %v68_v63 }
  0x33   :  { %537 = vmatpush3.msra.mxu0 %v68_v63 }
  0x34   :  { %538 = vmatprep.subr.mxu0 %v67_v5 }
  0x35   :  { %539 = vmatpush3.msra.mxu0 %v67_v5 }
  0x36   :  { %540 = vmatprep.subr.mxu0 %v66_v6 }
  0x37   :  { %541 = vmatpush3.msra.mxu0 %v66_v6 }
  0x38   :  { %543 = vmatmul.mubr.msk.f32.vlgmr.msra.gmra.mxu0 %vm126_vm1, %v71_v4 }
  0x39   :  { %545 = vmatprep.mubr.msk.f32.mxu0 %vm126_vm1, %v72_v1 }
  0x3c   :  { %546 = vmatmul.mubr.msk.f32.gmra.mxu0 %vm126_vm1, %v73_v0 }
  0x3d   :  { %548 = vmatprep.mubr.msk.f32.mxu0 %vm126_vm1, %v74_v2 }
  0x40   :  { %549 = vmatmul.mubr.msk.f32.gmra.mxu0 %vm126_vm1, %v75_v7 }
  0x41   :  { %551 = vmatprep.mubr.msk.f32.mxu0 %vm126_vm1, %v76_v8 }
  0x44   :  { %552 = vmatmul.mubr.msk.f32.gmra.mxu0 %vm126_vm1, %v77_v9 }
  0x45   :  { %570 = vmatprep.mubr.msk.f32.mxu0 %vm320_vm2, %v264_v10 }
  0x7e   :  { %v114_v16 = vpop.permute.xlu1 %113 }
  0x7f   :  { %v124_v14 = vpop.permute.xlu0 %123 }
  0x82   :  { %v109_v21 = vpop.permute.xlu1 %108 }
  0x83   :  { %v119_v19 = vpop.permute.xlu0 %118 }
  0x86   :  { %v99_v29 = vpop.permute.xlu1 %98 }
  0x87   :  { %v104_v27 = vpop.permute.xlu0 %103 }
  0x8a   :  { %v89_v34 = vpop.permute.xlu1 %88 }
  0x8b   :  { %v94_v32 = vpop.permute.xlu0 %93 }
  0x8e   :  { %v308_v51 = vpop.permute.xlu1 %307 }
  0x8f   :  { %v303_v53 = vpop.permute.xlu0 %302 }
  0x92   :  { %v318_v59 = vpop.permute.xlu1 %317 }
  0x93   :  { %v313_v63 = vpop.permute.xlu0 %312 }
  0xf8   :  { %v544_v12 = vpop.f32.mrf.mxu0 }
  0xf9   :  { %v223_v33 = vadd.f32 %v544_v12, %v94_v32 }
  0xfa   :  { %v217_v13 = vpop.f32.mrf.mxu0 }
  0xfb   :  { %v218_v35 = vadd.f32 %v217_v13, %v89_v34  ;;  %v288_v13 = vpop.permute.xlu1 %287 }
  0xfc   :  { %v547_v15 = vpop.f32.mrf.mxu0 }
  0xfd   :  { %v233_v30 = vadd.f32 %v547_v15, %v104_v27 }
  0xfe   :  { %v227_v17 = vpop.f32.mrf.mxu0 }
  0xff   :  { %v228_v31 = vadd.f32 %v227_v17, %v99_v29 }
 0x100   :  { %v550_v18 = vpop.f32.mrf.mxu0 }
 0x101   :  { %v243_v25 = vadd.f32 %v550_v18, %v114_v16 }
 0x102   :  { %v237_v20 = vpop.f32.mrf.mxu0 }
 0x103   :  { %v238_v28 = vadd.f32 %v237_v20, %v109_v21  ;;  %v298_v21 = vpop.permute.xlu1 %297 }
 0x104   :  { %v553_v22 = vpop.f32.mrf.mxu0 }
 0x105   :  { %v253_v23 = vadd.f32 %v553_v22, %v124_v14  ;;  %v283_v14 = vpop.permute.xlu0 %282 }
 0x106   :  { %v247_v24 = vpop.f32.mrf.mxu0 }
 0x107   :  { %603 = vtanh.f32 %v253_v23  ;;  %v248_v26 = vadd.f32 %v247_v24, %v119_v19 }
 0x109   :  { %605 = vtanh.f32 %v248_v26 }
 0x10a   :  { %607 = vtanh.f32 %v243_v25  ;;  %v293_v25 = vpop.permute.xlu0 %292 }
 0x10b   :  { %609 = vtanh.f32 %v238_v28 }
 0x10c   :  { %611 = vtanh.f32 %v233_v30 }
 0x10d   :  { %613 = vtanh.f32 %v228_v31 }
 0x10e   :  { %615 = vtanh.f32 %v223_v33 }
 0x10f   :  { %617 = vtanh.f32 %v218_v35 }
 0x114   :  { %v604_v36 = vpop.eup %603 }
 0x115   :  { %554 = vmatprep.subr.mxu0 %v604_v36  ;;  %582 = vmatprep.subr.mxu1 %v604_v36 }
 0x116   :  { %v606_v37 = vpop.eup %605  ;;  %555 = vmatpush3.msra.mxu0 %v604_v36  ;;  %590 = vmatpush3.msra.mxu1 %v604_v36 }
 0x117   :  { %556 = vmatprep.subr.mxu0 %v606_v37  ;;  %583 = vmatprep.subr.mxu1 %v606_v37  ;;  %v608_v38 = vpop.eup %607 }
 0x118   :  { %557 = vmatpush3.msra.mxu0 %v606_v37  ;;  %591 = vmatpush3.msra.mxu1 %v606_v37  ;;  %v610_v39 = vpop.eup %609 }
 0x119   :  { %558 = vmatprep.subr.mxu0 %v608_v38  ;;  %584 = vmatprep.subr.mxu1 %v608_v38  ;;  %v612_v40 = vpop.eup %611 }
 0x11a   :  { %559 = vmatpush3.msra.mxu0 %v608_v38  ;;  %592 = vmatpush3.msra.mxu1 %v608_v38  ;;  %v614_v41 = vpop.eup %613 }
 0x11b   :  { %560 = vmatprep.subr.mxu0 %v610_v39  ;;  %585 = vmatprep.subr.mxu1 %v610_v39  ;;  %v616_v42 = vpop.eup %615 }
 0x11c   :  { %561 = vmatpush3.msra.mxu0 %v610_v39  ;;  %593 = vmatpush3.msra.mxu1 %v610_v39  ;;  %v618_v43 = vpop.eup %617 }
 0x11d   :  { %562 = vmatprep.subr.mxu0 %v612_v40  ;;  %586 = vmatprep.subr.mxu1 %v612_v40 }
 0x11e   :  { %563 = vmatpush3.msra.mxu0 %v612_v40  ;;  %594 = vmatpush3.msra.mxu1 %v612_v40 }
 0x11f   :  { %564 = vmatprep.subr.mxu0 %v614_v41  ;;  %587 = vmatprep.subr.mxu1 %v614_v41 }
 0x120   :  { %565 = vmatpush3.msra.mxu0 %v614_v41  ;;  %595 = vmatpush3.msra.mxu1 %v614_v41 }
 0x121   :  { %566 = vmatprep.subr.mxu0 %v616_v42  ;;  %588 = vmatprep.subr.mxu1 %v616_v42 }
 0x122   :  { %567 = vmatpush3.msra.mxu0 %v616_v42  ;;  %596 = vmatpush3.msra.mxu1 %v616_v42 }
 0x123   :  { %568 = vmatprep.subr.mxu0 %v618_v43  ;;  %589 = vmatprep.subr.mxu1 %v618_v43 }
 0x124   :  { %569 = vmatpush3.msra.mxu0 %v618_v43  ;;  %597 = vmatpush3.msra.mxu1 %v618_v43 }
 0x125   :  { %571 = vmatmul.mubr.msk.f32.vlgmr.msra.gmra.mxu0 %vm320_vm2, %v265_v44  ;;  %574 = vmatmul.mubr.msk.f32.vlgmr.msra.gmra.mxu1 %vm320_vm2, %v267_v45 }
 0x126   :  { %576 = vmatprep.mubr.msk.f32.mxu1 %vm320_vm2, %v268_v46 }
 0x129   :  { %577 = vmatmul.mubr.msk.f32.gmra.mxu1 %vm320_vm2, %v269_v47 }
 0x12a   :  { %579 = vmatprep.mubr.msk.f32.mxu1 %vm320_vm2, %v270_v48 }
 0x12d   :  { %580 = vmatmul.mubr.msk.f32.gmra.mxu1 %vm320_vm2, %v271_v49 }
 0x1e5   :  { %v575_v50 = vpop.f32.mrf.mxu1  ;;  %v572_v12 = vpop.f32.mrf.mxu0 }
 0x1e6   :  { %v417_v16 = vadd.f32 %v572_v12, %v288_v13  ;;  %v427_v22 = vadd.f32 %v575_v50, %v298_v21 }
 0x1e7   :  { %v421_v52 = vpop.f32.mrf.mxu1  ;;  %v411_v15 = vpop.f32.mrf.mxu0 }
 0x1e8   :  { %v412_v18 = vadd.f32 %v411_v15, %v283_v14  ;;  %v422_v26 = vadd.f32 %v421_v52, %v293_v25 }
 0x1e9   :  { %v578_v54 = vpop.f32.mrf.mxu1 }
 0x1ea   :  { %v437_v55 = vadd.f32 %v578_v54, %v308_v51 }
 0x1eb   :  { %v431_v56 = vpop.f32.mrf.mxu1 }
 0x1ec   :  { %v503_v57 = vmul.f32 -1.442695, %v437_v55  ;;  %v432_v58 = vadd.f32 %v431_v56, %v303_v53 }
 0x1ed   :  { %v581_v60 = vpop.f32.mrf.mxu1 }
 0x1ee   :  { %619 = vpow2.f32 %v503_v57  ;;  %v502_v61 = vmul.f32 -1.442695, %v432_v58  ;;  %v447_v62 = vadd.f32 %v581_v60, %v318_v59 }
 0x1ef   :  { %v441_v3 = vpop.f32.mrf.mxu1 }
 0x1f0   :  { %621 = vpow2.f32 %v502_v61  ;;  %v505_v5 = vmul.f32 -1.442695, %v447_v62  ;;  %v442_v6 = vadd.f32 %v441_v3, %v313_v63 }
 0x1f2   :  { %623 = vpow2.f32 %v505_v5  ;;  %v504_v4 = vmul.f32 -1.442695, %v442_v6 }
 0x1f4   :  { %625 = vpow2.f32 %v504_v4 }
 0x1fb   :  { %v620_v1 = vpop.eup %619 }
 0x1fc   :  { %v463_v0 = vadd.f32 1.0, %v620_v1 }
 0x1fd   :  { %v622_v2 = vpop.eup %621 }
 0x1fe   :  { %627 = vrcp.f32 %v463_v0  ;;  %v462_v7 = vadd.f32 1.0, %v622_v2 }
 0x1ff   :  { %v624_v8 = vpop.eup %623 }
 0x200   :  { %629 = vrcp.f32 %v462_v7  ;;  %v465_v9 = vadd.f32 1.0, %v624_v8 }
 0x201   :  { %v626_v10 = vpop.eup %625 }
 0x202   :  { %631 = vrcp.f32 %v465_v9  ;;  %v464_v11 = vadd.f32 1.0, %v626_v10 }
 0x204   :  { %633 = vrcp.f32 %v464_v11 }
 0x20b   :  { %v628_v17 = vpop.eup %627 }
 0x20c   :  { %v475_v19 = vmul.f32 %v628_v17, %v417_v16 }
 0x20d   :  { %v630_v20 = vpop.eup %629 }
 0x20e   :  { %479 = vst.msk [vmem:[%s843_s5 + $0x8] sm:$0xff] %vm24_vm0, %v475_v19  ;;  %v474_v23 = vmul.f32 %v630_v20, %v412_v18 }
 0x20f   :  { %v632_v24 = vpop.eup %631 }
 0x210   :  { %478 = vst.msk [vmem:[%s843_s5] sm:$0xff] %vm24_vm0, %v474_v23  ;;  %v477_v27 = vmul.f32 %v632_v24, %v427_v22 }
 0x211   :  { %v634_v28 = vpop.eup %633 }
 0x212   :  { %481 = vst.msk [vmem:[%s843_s5 + $0x18] sm:$0xff] %vm24_vm0, %v477_v27  ;;  %v476_v29 = vmul.f32 %v634_v28, %v422_v26 }
 0x214   :  { %480 = vst.msk [vmem:[%s843_s5 + $0x10] sm:$0xff] %vm24_vm0, %v476_v29 }

</bundles_post_ra>
